<compile_context>
chip_gen: v6e
topology: v6e:2x2x1
jax: 0.10.0
libtpu: 0.0.40
codegen_flags: <defaults>
</compile_context>

<pallas_src>
import jax
import jax.numpy as jnp
from jax.experimental import pallas as pl
from jax.experimental.pallas import tpu as pltpu


def _round_up(x, m):
    return ((x + m - 1) // m) * m


def _layout(state_dim, action_dim):
    """Row offsets inside the packed bf16 weight buffer.

    Sections are 16-row aligned so every static slice starts on a bf16
    (16,128) sublane tile boundary (copy-free slicing):
      rows [0, state_dim)            : W1s  (state -> lanes 0:64)
      rows [s_rows, s_rows+action_dim): W1a (action -> lanes 64:128)
      rows [w2_off, w2_off+128)      : W2f  blockdiag(s_w1, a_w1)
      rows [w3_off, w3_off+128)      : W3f  blockdiag(s_w2, a_w2)
    """
    s_rows = _round_up(max(state_dim, 1), 16)
    a_rows = _round_up(max(action_dim, 1), 16)
    w2_off = s_rows + a_rows
    w3_off = w2_off + 128
    rows = w3_off + 128
    return s_rows, a_rows, w2_off, w3_off, rows


def pack_params(params, state_dim, action_dim):
    """Pack all weights into one bf16 (R,128) buffer and all biases + the head
    into one f32 (8,128) buffer.  Built once at setup time."""
    s_w, s_b, a_w, a_b, w_out, b_out = params
    s_rows, a_rows, w2_off, w3_off, rows = _layout(state_dim, action_dim)

    w = jnp.zeros((rows, 128), jnp.float32)
    # layer 1: state branch -> lanes 0:64, action branch -> lanes 64:128
    w = w.at[0:state_dim, 0:64].set(s_w[0])
    w = w.at[s_rows:s_rows + action_dim, 64:128].set(a_w[0])
    # layer 2: block-diag inside the fused 128-wide hidden (out lanes 0:64)
    w = w.at[w2_off:w2_off + 64, 0:32].set(s_w[1])
    w = w.at[w2_off + 64:w2_off + 128, 32:64].set(a_w[1])
    # layer 3: out lanes 0:16
    w = w.at[w3_off:w3_off + 32, 0:8].set(s_w[2])
    w = w.at[w3_off + 32:w3_off + 64, 8:16].set(a_w[2])
    w = w.astype(jnp.bfloat16)                      # bf16-native MXU operands

    misc = jnp.zeros((8, 128), jnp.float32)         # biases + head stay f32
    misc = misc.at[0, 0:64].set(s_b[0][0])
    misc = misc.at[0, 64:128].set(a_b[0][0])
    misc = misc.at[1, 0:32].set(s_b[1][0])
    misc = misc.at[1, 32:64].set(a_b[1][0])
    misc = misc.at[2, 0:8].set(s_b[2][0])
    misc = misc.at[2, 8:16].set(a_b[2][0])
    misc = misc.at[3, 0:16].set(w_out[:, 0])        # head weight as a lane row
    misc = misc.at[4, :].set(b_out[0, 0])           # head bias (broadcast)
    return w, misc


def _make_critic_kernel(state_dim, action_dim, s_rows, w2_off, w3_off):
    def kernel(s_ref, a_ref, w_ref, m_ref, out_ref):
        # layer 1: two narrow bf16 dots into the fused 128-lane hidden
        # (lanes 0:64 = state branch, 64:128 = action branch); f32 accumulate.
        h = jnp.dot(s_ref[...].astype(jnp.bfloat16), w_ref[0:state_dim, :],
                    preferred_element_type=jnp.float32)
        h = h + jnp.dot(a_ref[...].astype(jnp.bfloat16),
                        w_ref[s_rows:s_rows + action_dim, :],
                        preferred_element_type=jnp.float32)
        h = jnp.maximum(h + m_ref[0:1, :], 0.0)
        # layer 2 (padded lanes stay exactly zero: zero weights + zero bias)
        h = jnp.maximum(
            jnp.dot(h.astype(jnp.bfloat16), w_ref[w2_off:w2_off + 128, :],
                    preferred_element_type=jnp.float32) + m_ref[1:2, :], 0.0)
        # layer 3
        h = jnp.maximum(
            jnp.dot(h.astype(jnp.bfloat16), w_ref[w3_off:w3_off + 128, :],
                    preferred_element_type=jnp.float32) + m_ref[2:3, :], 0.0)
        # head (K=16, N=1): VPU multiply + XLU lane-reduce in f32, no MXU push
        q = jnp.sum(h * m_ref[3:4, :], axis=-1, keepdims=True) + m_ref[4:5, 0:1]
        out_ref[...] = q

    return kernel


def critic_forward(state, action, packed, *, tile_b=4096):
    """q = Critic(state, action) using the fused/packed Pallas kernel."""
    w_packed, misc = packed
    B, state_dim = state.shape
    action_dim = action.shape[1]
    s_rows, a_rows, w2_off, w3_off, rows = _layout(state_dim, action_dim)
    assert w_packed.shape == (rows, 128) and misc.shape == (8, 128)

    # Batch tiling.  Large tiles amortize the ~0.35us/grid-step overhead (the
    # per-step live set is only a few MiB even at 4096 rows with bf16 dots);
    # once the batch is big enough we keep an even number (>=2) of tiles so the
    # "parallel" axis splits across both v7x TensorCores.
    if B <= 512:
        tile_b, num_tiles = B, 1                 # one exact tile, no padding
    else:
        tile_b = min(max(8, _round_up(tile_b, 8)),
                     _round_up(pl.cdiv(B, 2), 8))    # at least 2 tiles
        num_tiles = pl.cdiv(B, tile_b)
        if num_tiles % 2 == 1:                        # v7x: even tile count
            tile_b = max(8, _round_up(pl.cdiv(B, num_tiles + 1), 8))
            num_tiles = pl.cdiv(B, tile_b)

    flops = 2 * B * ((state_dim + action_dim) * 128 + 2 * 128 * 128 + 128)
    bytes_accessed = (B * (state_dim + action_dim + 1)) * 4 \
        + w_packed.size * 2 + misc.size * 4

    q = pl.pallas_call(
        _make_critic_kernel(state_dim, action_dim, s_rows, w2_off, w3_off),
        out_shape=jax.ShapeDtypeStruct((B, 1), jnp.float32),
        grid=(num_tiles,),
        in_specs=[
            pl.BlockSpec((tile_b, state_dim), lambda i: (i, 0)),   # batch-tiled
            pl.BlockSpec((tile_b, action_dim), lambda i: (i, 0)),  # batch-tiled
            pl.BlockSpec((rows, 128), lambda i: (0, 0)),   # weights, VMEM-resident
            pl.BlockSpec((8, 128), lambda i: (0, 0)),      # biases/head, resident
        ],
        out_specs=pl.BlockSpec((tile_b, 1), lambda i: (i, 0)),
        compiler_params=pltpu.CompilerParams(
            dimension_semantics=("parallel",),
            vmem_limit_bytes=32 * 1024 * 1024),
        cost_estimate=pl.CostEstimate(flops=flops, transcendentals=0,
                                      bytes_accessed=bytes_accessed),
    )(state, action, w_packed, misc)
    return q


def make_params(state_dim, action_dim, key):
    """Deterministic init matching Critic._init_weight:
       xavier_uniform weights / 0.01 bias for hidden, normal weights / 0.01 bias for out."""
    s_dims = [state_dim, 64, 32, 8]
    a_dims = [action_dim, 64, 32, 8]   # module reuses s_layer for a_hidden
    keys = jax.random.split(key, 7)

    def xavier(k, fan_in, fan_out):
        bound = (6.0 / (fan_in + fan_out)) ** 0.5
        return jax.random.uniform(k, (fan_in, fan_out), jnp.float32, -bound, bound)

    s_w, s_b, a_w, a_b = [], [], [], []
    ki = 0
    for i in range(3):
        s_w.append(xavier(keys[ki], s_dims[i], s_dims[i + 1])); ki += 1
        s_b.append(jnp.full((1, s_dims[i + 1]), 0.01, jnp.float32))
    for i in range(3):
        a_w.append(xavier(keys[ki], a_dims[i], a_dims[i + 1])); ki += 1
        a_b.append(jnp.full((1, a_dims[i + 1]), 0.01, jnp.float32))
    w_out = jax.random.normal(keys[ki], (16, 1), jnp.float32)   # nn.init.normal_
    b_out = jnp.full((1, 1), 0.01, jnp.float32)
    return s_w, s_b, a_w, a_b, w_out, b_out


def critic_reference(state, action, params, *, cast_bf16=False):
    """Pure-JAX reference matching the PyTorch forward.  With cast_bf16=True it
    mirrors the kernel's numerics (bf16 matmul operands, f32 accumulation,
    f32 bias/ReLU/head) for a tight comparison."""
    s_w, s_b, a_w, a_b, w_out, b_out = params

    def mm(x, w):
        if cast_bf16:
            x = x.astype(jnp.bfloat16)
            w = w.astype(jnp.bfloat16)
        return jnp.dot(x, w, preferred_element_type=jnp.float32)

    s = state
    for w, b in zip(s_w, s_b):
        s = jnp.maximum(mm(s, w) + b, 0.0)
    a = action
    for w, b in zip(a_w, a_b):
        a = jnp.maximum(mm(a, w) + b, 0.0)
    x = jnp.concatenate([s, a], axis=1)
    return jnp.dot(x, w_out, preferred_element_type=jnp.float32) + b_out


if __name__ == "__main__":
    batch, state_dim, action_dim = 2, 16, 4
    key = jax.random.PRNGKey(0)
    k_state, k_action, k_params = jax.random.split(key, 3)

    state = jax.random.normal(k_state, (batch, state_dim), jnp.float32)
    action = jax.random.normal(k_action, (batch, action_dim), jnp.float32)
    params = make_params(state_dim, action_dim, k_params)
    packed = pack_params(params, state_dim, action_dim)   # built once at setup

    q = critic_forward(state, action, packed)
    q = jax.block_until_ready(q)

    # Tight check vs. a reference that mirrors the kernel's bf16/f32 numerics,
    # plus a looser sanity check vs. the pure-f32 reference.
    q_ref_bf16 = critic_reference(state, action, params, cast_bf16=True)
    q_ref_f32 = critic_reference(state, action, params, cast_bf16=False)
    assert q.shape == (batch, 1)
    assert jnp.allclose(q, q_ref_bf16, atol=5e-3, rtol=5e-3), (q, q_ref_bf16)
    assert jnp.allclose(q, q_ref_f32, atol=5e-2, rtol=5e-2), (q, q_ref_f32)
    print("KERNEL_OK")
</pallas_src>

<mosaic_0001>
module attributes {stable_mosaic.version = 11 : i64} {
  func.func @kernel(%arg0: i32, %arg1: memref<2x16xf32, #tpu.memory_space<vmem>>, %arg2: memref<2x4xf32, #tpu.memory_space<vmem>>, %arg3: memref<288x128xbf16, #tpu.memory_space<vmem>>, %arg4: memref<8x128xf32, #tpu.memory_space<vmem>>, %arg5: memref<2x1xf32, #tpu.memory_space<vmem>>) attributes {dimension_semantics = [#tpu.dimension_semantics<parallel>], iteration_bounds = array<i64: 1>, scalar_prefetch = 0 : i64, scratch_operands = 0 : i64, tpu.core_type = #tpu.core_type<tc>, window_params = [{transform_indices = @transform_0, window_bounds = array<i64: 2, 16>}, {transform_indices = @transform_1, window_bounds = array<i64: 2, 4>}, {pipeline_mode = #tpu.pipeline_mode<synchronous>, transform_indices = @transform_2, window_bounds = array<i64: 288, 128>}, {pipeline_mode = #tpu.pipeline_mode<synchronous>, transform_indices = @transform_3, window_bounds = array<i64: 8, 128>}, {transform_indices = @transform_4, window_bounds = array<i64: 2, 1>}]} {
    %c0 = arith.constant 0 : index
    %c0_0 = arith.constant 0 : index
    %0 = vector.load %arg1[%c0, %c0_0] : memref<2x16xf32, #tpu.memory_space<vmem>>, vector<2x16xf32>
    %1 = arith.truncf %0 : vector<2x16xf32> to vector<2x16xbf16>
    %c0_1 = arith.constant 0 : index
    %c0_2 = arith.constant 0 : index
    %2 = vector.load %arg3[%c0_1, %c0_2] : memref<288x128xbf16, #tpu.memory_space<vmem>>, vector<16x128xbf16>
    %cst = arith.constant dense<0.000000e+00> : vector<2x128xf32>
    %3 = tpu.matmul %1, %2, %cst {dimension_numbers = #tpu.dot_dimension_numbers<[1], [0], [0], [1], [0, 0, 1, 1], [], []>} : vector<2x16xbf16>, vector<16x128xbf16>, vector<2x128xf32> -> vector<2x128xf32>
    %c0_3 = arith.constant 0 : index
    %c0_4 = arith.constant 0 : index
    %4 = vector.load %arg2[%c0_3, %c0_4] : memref<2x4xf32, #tpu.memory_space<vmem>>, vector<2x4xf32>
    %5 = arith.truncf %4 : vector<2x4xf32> to vector<2x4xbf16>
    %c16 = arith.constant 16 : index
    %c0_5 = arith.constant 0 : index
    %6 = vector.load %arg3[%c16, %c0_5] : memref<288x128xbf16, #tpu.memory_space<vmem>>, vector<4x128xbf16>
    %cst_6 = arith.constant dense<0.000000e+00> : vector<2x128xf32>
    %7 = tpu.matmul %5, %6, %cst_6 {dimension_numbers = #tpu.dot_dimension_numbers<[1], [0], [0], [1], [0, 0, 1, 1], [], []>} : vector<2x4xbf16>, vector<4x128xbf16>, vector<2x128xf32> -> vector<2x128xf32>
    %8 = arith.addf %3, %7 : vector<2x128xf32>
    %c0_7 = arith.constant 0 : index
    %c0_8 = arith.constant 0 : index
    %9 = vector.load %arg4[%c0_7, %c0_8] : memref<8x128xf32, #tpu.memory_space<vmem>>, vector<1x128xf32>
    %10 = vector.broadcast %9 : vector<1x128xf32> to vector<2x128xf32>
    %11 = arith.addf %8, %10 : vector<2x128xf32>
    %cst_9 = arith.constant 0.000000e+00 : f32
    %12 = vector.broadcast %cst_9 : f32 to vector<2x128xf32>
    %13 = arith.maximumf %11, %12 : vector<2x128xf32>
    %14 = arith.truncf %13 : vector<2x128xf32> to vector<2x128xbf16>
    %c32 = arith.constant 32 : index
    %c0_10 = arith.constant 0 : index
    %15 = vector.load %arg3[%c32, %c0_10] : memref<288x128xbf16, #tpu.memory_space<vmem>>, vector<128x128xbf16>
    %cst_11 = arith.constant dense<0.000000e+00> : vector<2x128xf32>
    %16 = tpu.matmul %14, %15, %cst_11 {dimension_numbers = #tpu.dot_dimension_numbers<[1], [0], [0], [1], [0, 0, 1, 1], [], []>} : vector<2x128xbf16>, vector<128x128xbf16>, vector<2x128xf32> -> vector<2x128xf32>
    %c1 = arith.constant 1 : index
    %c0_12 = arith.constant 0 : index
    %17 = vector.load %arg4[%c1, %c0_12] : memref<8x128xf32, #tpu.memory_space<vmem>>, vector<1x128xf32>
    %18 = vector.broadcast %17 : vector<1x128xf32> to vector<2x128xf32>
    %19 = arith.addf %16, %18 : vector<2x128xf32>
    %cst_13 = arith.constant 0.000000e+00 : f32
    %20 = vector.broadcast %cst_13 : f32 to vector<2x128xf32>
    %21 = arith.maximumf %19, %20 : vector<2x128xf32>
    %22 = arith.truncf %21 : vector<2x128xf32> to vector<2x128xbf16>
    %c160 = arith.constant 160 : index
    %c0_14 = arith.constant 0 : index
    %23 = vector.load %arg3[%c160, %c0_14] : memref<288x128xbf16, #tpu.memory_space<vmem>>, vector<128x128xbf16>
    %cst_15 = arith.constant dense<0.000000e+00> : vector<2x128xf32>
    %24 = tpu.matmul %22, %23, %cst_15 {dimension_numbers = #tpu.dot_dimension_numbers<[1], [0], [0], [1], [0, 0, 1, 1], [], []>} : vector<2x128xbf16>, vector<128x128xbf16>, vector<2x128xf32> -> vector<2x128xf32>
    %c2 = arith.constant 2 : index
    %c0_16 = arith.constant 0 : index
    %25 = vector.load %arg4[%c2, %c0_16] : memref<8x128xf32, #tpu.memory_space<vmem>>, vector<1x128xf32>
    %26 = vector.broadcast %25 : vector<1x128xf32> to vector<2x128xf32>
    %27 = arith.addf %24, %26 : vector<2x128xf32>
    %cst_17 = arith.constant 0.000000e+00 : f32
    %28 = vector.broadcast %cst_17 : f32 to vector<2x128xf32>
    %29 = arith.maximumf %27, %28 : vector<2x128xf32>
    %c3 = arith.constant 3 : index
    %c0_18 = arith.constant 0 : index
    %30 = vector.load %arg4[%c3, %c0_18] : memref<8x128xf32, #tpu.memory_space<vmem>>, vector<1x128xf32>
    %31 = vector.broadcast %30 : vector<1x128xf32> to vector<2x128xf32>
    %32 = arith.mulf %29, %31 : vector<2x128xf32>
    %cst_19 = arith.constant dense<0.000000e+00> : vector<2xf32>
    %33 = vector.multi_reduction <add>, %32, %cst_19 [1] : vector<2x128xf32> to vector<2xf32>
    %34 = vector.shape_cast %33 : vector<2xf32> to vector<2x1xf32>
    %c4 = arith.constant 4 : index
    %c0_20 = arith.constant 0 : index
    %35 = vector.load %arg4[%c4, %c0_20] : memref<8x128xf32, #tpu.memory_space<vmem>>, vector<1x1xf32>
    %36 = vector.broadcast %35 : vector<1x1xf32> to vector<2x1xf32>
    %37 = arith.addf %34, %36 : vector<2x1xf32>
    %c0_21 = arith.constant 0 : index
    %c0_22 = arith.constant 0 : index
    %38 = vector.load %arg5[%c0_21, %c0_22] : memref<2x1xf32, #tpu.memory_space<vmem>>, vector<2x1xf32>
    tpu.vector_store %arg5[%c0_21, %c0_22], %37 {strides = array<i32>} : memref<2x1xf32, #tpu.memory_space<vmem>>, vector<2x1xf32>,
    return
  }
  func.func @transform_0(%arg0: i32) -> (i32, i32) {
    %c0_i32 = arith.constant 0 : i32
    %c0_i32_0 = arith.constant 0 : i32
    return %arg0, %c0_i32 : i32, i32
  }
  func.func @transform_1(%arg0: i32) -> (i32, i32) {
    %c0_i32 = arith.constant 0 : i32
    %c0_i32_0 = arith.constant 0 : i32
    return %arg0, %c0_i32 : i32, i32
  }
  func.func @transform_2(%arg0: i32) -> (i32, i32) {
    %c0_i32 = arith.constant 0 : i32
    %c0_i32_0 = arith.constant 0 : i32
    %c0_i32_1 = arith.constant 0 : i32
    return %c0_i32, %c0_i32_0 : i32, i32
  }
  func.func @transform_3(%arg0: i32) -> (i32, i32) {
    %c0_i32 = arith.constant 0 : i32
    %c0_i32_0 = arith.constant 0 : i32
    %c0_i32_1 = arith.constant 0 : i32
    return %c0_i32, %c0_i32_0 : i32, i32
  }
  func.func @transform_4(%arg0: i32) -> (i32, i32) {
    %c0_i32 = arith.constant 0 : i32
    %c0_i32_0 = arith.constant 0 : i32
    return %arg0, %c0_i32 : i32, i32
  }
}

</mosaic_0001>

<bundles_post_ra>
// kernel: tpu_custom_call.1
= control target key start
LH: loop header
LB: loop body
LE: loop exit
PB: predicated region body
PF: predicated region fallthrough
CT: control target
= control target key end

     0   :  { %9 = vsyncpa [#allocation3], 0  ;;  %s710_s0 = inlined_call_operand.hbm [shape: f32[2,16], index: 0, kind: input, shape index: {}]   ;;  %s711_s1 = inlined_call_operand.hbm [shape: f32[2,4], index: 1, kind: input, shape index: {}]   ;;  %s712_s2 = inlined_call_operand.hbm [shape: bf16[288,128], index: 2, kind: input, shape index: {}]   ;;  %s713_s3 = inlined_call_operand.hbm [shape: f32[8,128], index: 3, kind: input, shape index: {}]   ;;  %s714_s4 = inlined_call_operand.vmem [shape: f32[2,1], index: 4, kind: output, shape index: {}]  }
   0x1   :  { %10 = vsyncpa [#allocation5], 0 }
   0x2   :  { %11 = vsyncpa [#allocation8], 0  ;;  %s634_s15 = smov [#allocation4]   ;;  %s635_s17 = smov [#allocation2]  }
   0x3   :  { %s28_s16 = sshll.u32 %s634_s15, 4  ;;  %s18_s18 = sshll.u32 %s635_s17, 4  ;;  %s29_s16 = int_to_ptr.vmem [resolvable:$true] %s28_s16  ;;  %s19_s18 = int_to_ptr.vmem [resolvable:$true] %s18_s18 }
   0x4   :  { %s556_s19 = scalar_lea.vmem %s29_s16, 32  ;;  %p561_p1 = scmp.lt.s32.totalorder %s29_s16, %s29_s16 }
   0x5   :  { %p557_p0 = scmp.ne.s32.totalorder %s29_s16, %s556_s19  ;;  %p562_p2 = scmp.lt.s32.totalorder %s556_s19, %s556_s19 }
   0x7   :  { %p563_p3 = por %p562_p2, %p561_p1 }
   0x9   :  { %p564_p4 = pnand %p563_p3, %p557_p0 }
   0xb   :  { %567 = shalt.err (!%p564_p4)
}
   0xc   :  { %31 = dma.hbm_to_vmem [thread:$0]  %s711_s1, 32, %s29_s16, [#allocation5]  }
   0xd   :  { %s576_s22 = scalar_lea.vmem %s19_s18, 32  ;;  %p581_p6 = scmp.lt.s32.totalorder %s19_s18, %s19_s18 }
   0xe   :  { %p577_p5 = scmp.ne.s32.totalorder %s19_s18, %s576_s22  ;;  %p582_p7 = scmp.lt.s32.totalorder %s576_s22, %s576_s22 }
  0x10   :  { %p583_p8 = por %p582_p7, %p581_p6 }
  0x12   :  { %p584_p9 = pnand %p583_p8, %p577_p5 }
  0x14   :  { %587 = shalt.err (!%p584_p9)
}
  0x15   :  { %21 = dma.hbm_to_vmem [thread:$0]  %s710_s0, 32, %s19_s18, [#allocation3]  }
  0x16   :  { %s636_s25 = smov [#allocation6]  }
  0x17   :  { %s37_s26 = sshll.u32 %s636_s25, 4  ;;  %s38_s26 = int_to_ptr.vmem [resolvable:$true] %s37_s26 }
  0x18   :  { %s596_s27 = scalar_lea.vmem %s38_s26, 2304  ;;  %p601_p11 = scmp.lt.s32.totalorder %s38_s26, %s38_s26 }
  0x19   :  { %p597_p10 = scmp.ne.s32.totalorder %s38_s26, %s596_s27  ;;  %p602_p12 = scmp.lt.s32.totalorder %s596_s27, %s596_s27 }
  0x1b   :  { %p603_p13 = por %p602_p12, %p601_p11 }
  0x1d   :  { %p604_p0 = pnand %p603_p13, %p597_p10 }
  0x1f   :  { %607 = shalt.err (!%p604_p0)
}
  0x20   :  { %s637_s1 = smov 64   ;;  %s638_s28 = smov 4  }
  0x21   :  { %43 = dma.hbm_to_vmem [thread:$0]  %s712_s2, 2304, %s38_s26, [#allocation5], %s637_s1, %s637_s1, %s638_s28  }
  0x22   :  { %s639_s5 = smov [#allocation7]  }
  0x23   :  { %s50_s6 = sshll.u32 %s639_s5, 4  ;;  %s51_s6 = int_to_ptr.vmem [resolvable:$true] %s50_s6 }
  0x24   :  { %s616_s0 = scalar_lea.vmem %s51_s6, 128  ;;  %p621_p2 = scmp.lt.s32.totalorder %s51_s6, %s51_s6 }
  0x25   :  { %p617_p1 = scmp.ne.s32.totalorder %s51_s6, %s616_s0  ;;  %p622_p3 = scmp.lt.s32.totalorder %s616_s0, %s616_s0 }
  0x27   :  { %p623_p4 = por %p622_p3, %p621_p2 }
  0x29   :  { %p624_p5 = pnand %p623_p4, %p617_p1 }
  0x2b   :  { %627 = shalt.err (!%p624_p5)
}
  0x2c   :  { %53 = dma.hbm_to_vmem [thread:$0]  %s713_s3, 128, %s51_s6, [#allocation8]  }
  0x2d   :  { %628 = dma.done.wait [#allocation3], 32  }
  0x2e   :  { %629 = vsyncadd [#allocation3], 4294967264 }
  0x2f   :  { %630 = dma.done.wait [#allocation5], 2336  }
  0x30   :  { %631 = vsyncadd [#allocation5], 4294964960 }
  0x31   :  { %632 = dma.done.wait [#allocation8], 128  }
  0x32   :  { %633 = vsyncadd [#allocation8], 4294967168  ;;  %v640_v0 = vmov 0.0   ;;  %vm641_vm0 = vmmov 0   ;;  %vm78_vm1 = vcmask 1041408   ;;  %v531_v3 = vld [vmem:[#allocation6] sm:$0xff]  }
  0x33   :  { %471 = vmatprep.subr.bf16.mxu0 %v640_v0  ;;  %477 = vmatprep.subr.bf16.mxu1 %v640_v0  ;;  %v73_v1 = vld [vmem:[#allocation6 + $0x8] sm:$0x3]  ;;  %v71_v4 = vld [vmem:[#allocation4] sm:$0x3]  ;;  %v67_v5 = vld [vmem:[#allocation2] sm:$0x3] }
  0x34   :  { %473 = vmatprep.mubr.msk.bf16.mxu0 %vm641_vm0, %v640_v0  ;;  %479 = vmatprep.mubr.msk.bf16.mxu1 %vm641_vm0, %v640_v0  ;;  %v80_v2 = vsel %vm78_vm1, %v73_v1, 0  ;;  %v72_v6 = vpack.c.bf16 %v71_v4, %v71_v4  ;;  %vm74_vm2 = vcmask 31744   ;;  %v68_v7 = vpack.c.bf16 %v67_v5, %v67_v5  ;;  %v532_v8 = vld [vmem:[#allocation6 + $0x48] sm:$0xff]   ;;  %v533_v9 = vld [vmem:[#allocation6 + $0x40] sm:$0xff]   ;;  %v534_v10 = vld [vmem:[#allocation6 + $0x38] sm:$0xff]  }
  0x35   :  { %472 = vmatpush3.bf16.msra.mxu0 %v80_v2  ;;  %478 = vmatpush3.bf16.msra.mxu1 %v531_v3  ;;  %vm128_vm3 = vcmask 130048   ;;  %v535_v11 = vld [vmem:[#allocation6 + $0x30] sm:$0xff]   ;;  %v536_v12 = vld [vmem:[#allocation6 + $0x28] sm:$0xff]   ;;  %v537_v13 = vld [vmem:[#allocation6 + $0x20] sm:$0xff]   ;;  %vm416_vm4 = vcmask 1024  }
  0x36   :  { %483 = vmatprep.subr.bf16.mxu0 %v640_v0  ;;  %503 = vmatprep.subr.bf16.mxu1 %v640_v0  ;;  %v538_v14 = vld [vmem:[#allocation6 + $0x18] sm:$0xff]   ;;  %v539_v15 = vld [vmem:[#allocation6 + $0x10] sm:$0xff]   ;;  %v540_v16 = vld [vmem:[#allocation6 + $0x88] sm:$0xff]  }
  0x37   :  { %v541_v17 = vld [vmem:[#allocation6 + $0x80] sm:$0xff]   ;;  %v542_v18 = vld [vmem:[#allocation6 + $0x78] sm:$0xff]   ;;  %v543_v19 = vld [vmem:[#allocation6 + $0x70] sm:$0xff]  }
  0x38   :  { %474 = vmatmul.mubr.msk.bf16.vlgmr.msra.gmra.mxu0 %vm74_vm2, %v72_v6  ;;  %480 = vmatmul.mubr.msk.bf16.vlgmr.msra.gmra.mxu1 %vm128_vm3, %v68_v7  ;;  %v544_v20 = vld [vmem:[#allocation6 + $0x68] sm:$0xff]   ;;  %v545_v21 = vld [vmem:[#allocation6 + $0x60] sm:$0xff]   ;;  %v428_v24 = vld [vmem:[#allocation7] ss:$0 sm:$0xff] }
  0x39   :  { %484 = vmatpush3.bf16.msra.mxu0 %v532_v8  ;;  %499 = vmatprep.mubr.msk.bf16.mxu0 %vm641_vm0, %v640_v0  ;;  %v546_v35 = vld [vmem:[#allocation6 + $0x58] sm:$0xff]   ;;  %v547_v36 = vld [vmem:[#allocation6 + $0x50] sm:$0xff]  }
  0x3a   :  { %485 = vmatprep.subr.bf16.mxu0 %v640_v0  ;;  %519 = vmatprep.mubr.msk.bf16.mxu1 %vm641_vm0, %v640_v0  ;;  %v429_v37 = vld [vmem:[#allocation7 + $0x1] ss:$0 sm:$0xff]  ;;  %v438_v45 = vld [vmem:[#allocation7 + $0x2] ss:$0 sm:$0xff]  ;;  %v447_v49 = vld [vmem:[#allocation7 + $0x3] ss:$0 sm:$0xff] }
  0x3b   :  { %504 = vmatpush3.bf16.msra.mxu1 %v540_v16  ;;  %v448_v55 = vld [vmem:[#allocation7 + $0x4] ss:$0 sm:$0xff] }
  0x3c   :  { %505 = vmatprep.subr.bf16.mxu1 %v640_v0 }
  0x3d   :  { %486 = vmatpush3.bf16.msra.mxu0 %v533_v9 }
  0x3e   :  { %487 = vmatprep.subr.bf16.mxu0 %v640_v0 }
  0x3f   :  { %506 = vmatpush3.bf16.msra.mxu1 %v541_v17 }
  0x40   :  { %507 = vmatprep.subr.bf16.mxu1 %v640_v0 }
  0x41   :  { %488 = vmatpush3.bf16.msra.mxu0 %v534_v10 }
  0x42   :  { %489 = vmatprep.subr.bf16.mxu0 %v640_v0 }
  0x43   :  { %508 = vmatpush3.bf16.msra.mxu1 %v542_v18 }
  0x44   :  { %509 = vmatprep.subr.bf16.mxu1 %v640_v0 }
  0x45   :  { %490 = vmatpush3.bf16.msra.mxu0 %v535_v11 }
  0x46   :  { %491 = vmatprep.subr.bf16.mxu0 %v640_v0 }
  0x47   :  { %510 = vmatpush3.bf16.msra.mxu1 %v543_v19 }
  0x48   :  { %511 = vmatprep.subr.bf16.mxu1 %v640_v0 }
  0x49   :  { %492 = vmatpush3.bf16.msra.mxu0 %v536_v12 }
  0x4a   :  { %493 = vmatprep.subr.bf16.mxu0 %v640_v0 }
  0x4b   :  { %512 = vmatpush3.bf16.msra.mxu1 %v544_v20 }
  0x4c   :  { %513 = vmatprep.subr.bf16.mxu1 %v640_v0 }
  0x4d   :  { %494 = vmatpush3.bf16.msra.mxu0 %v537_v13 }
  0x4e   :  { %495 = vmatprep.subr.bf16.mxu0 %v640_v0 }
  0x4f   :  { %514 = vmatpush3.bf16.msra.mxu1 %v545_v21 }
  0x50   :  { %515 = vmatprep.subr.bf16.mxu1 %v640_v0 }
  0x51   :  { %496 = vmatpush3.bf16.msra.mxu0 %v538_v14 }
  0x52   :  { %497 = vmatprep.subr.bf16.mxu0 %v640_v0 }
  0x53   :  { %516 = vmatpush3.bf16.msra.mxu1 %v546_v35 }
  0x54   :  { %517 = vmatprep.subr.bf16.mxu1 %v640_v0 }
  0x55   :  { %498 = vmatpush3.bf16.msra.mxu0 %v539_v15 }
  0x57   :  { %518 = vmatpush3.bf16.msra.mxu1 %v547_v36 }
  0xf8   :  { %v116_v22 = vpop.f32.mrf.mxu0  ;;  %v166_v23 = vpop.f32.mrf.mxu1 }
  0xf9   :  { %v167_v25 = vadd.f32 %v166_v23, %v116_v22 }
  0xfa   :  { %v475_v26 = vpop.f32.mrf.mxu0  ;;  %v481_v27 = vpop.f32.mrf.mxu1 }
  0xfb   :  { %v177_v28 = vadd.f32 %v428_v24, %v167_v25 }
  0xfc   :  { %v119_v29 = vpop.f32.mrf.mxu0  ;;  %v169_v30 = vpop.f32.mrf.mxu1 }
  0xfd   :  { %v178_v31 = vmax.f32 %v177_v28, 0.0 }
  0xfe   :  { %v476_v32 = vpop.f32.mrf.mxu0  ;;  %v482_v33 = vpop.f32.mrf.mxu1 }
  0xff   :  { %v179_v34 = vpack.c.bf16 %v178_v31, %v178_v31 }
 0x101   :  { %500 = vmatmul.mubr.bf16.vlgmr.msra.gmra.mxu0 %v179_v34 }
 0x1c1   :  { %v283_v38 = vpop.f32.mrf.mxu0 }
 0x1c2   :  { %v284_v39 = vadd.f32 %v429_v37, %v283_v38 }
 0x1c3   :  { %v501_v40 = vpop.f32.mrf.mxu0 }
 0x1c4   :  { %v289_v41 = vmax.f32 %v284_v39, 0.0 }
 0x1c5   :  { %v286_v42 = vpop.f32.mrf.mxu0 }
 0x1c6   :  { %v290_v43 = vpack.c.bf16 %v289_v41, %v289_v41 }
 0x1c7   :  { %v502_v44 = vpop.f32.mrf.mxu0 }
 0x1c8   :  { %520 = vmatmul.mubr.bf16.vlgmr.msra.gmra.mxu1 %v290_v43 }
 0x288   :  { %v394_v46 = vpop.f32.mrf.mxu1 }
 0x289   :  { %v395_v47 = vadd.f32 %v438_v45, %v394_v46 }
 0x28a   :  { %v521_v48 = vpop.f32.mrf.mxu1 }
 0x28b   :  { %v400_v50 = vmax.f32 %v395_v47, 0.0 }
 0x28c   :  { %v397_v51 = vpop.f32.mrf.mxu1 }
 0x28d   :  { %v406_v52 = vmul.f32 %v447_v49, %v400_v50 }
 0x28e   :  { %v522_v53 = vpop.f32.mrf.mxu1 }
 0x28f   :  { %v407_v54 = vsel %vm78_vm1, %v406_v52, 0.0 }
 0x290   :  { %408 = vadd.xlane.f32.xlu0 %v407_v54 }
 0x319   :  { %v409_v56 = vpop.xlane.xlu0 %408 }
 0x31a   :  { %v415_v57 = vadd.f32 %v448_v55, %v409_v56 }
 0x31c   :  { %417 = vst.msk [vmem:[%s714_s4] sm:$0x3] %vm416_vm4, %v415_v57 }
 0x31d   :  { %422 = vsyncpa [#allocation3], 1 }
 0x31e   :  { %423 = vsyncpa [#allocation5], 1 }
 0x31f   :  { %424 = vsyncpa [#allocation8], 1 }

</bundles_post_ra>
